<compile_context>
chip_gen: v5e
topology: v5e:2x2
jax: 0.10.0
libtpu: 0.0.40
codegen_flags: <defaults>
</compile_context>

<pallas_src>
import math

import jax
import jax.numpy as jnp
import numpy as np
from jax.experimental import pallas as pl
from jax.experimental.pallas import tpu as pltpu

EPS = 1e-5

# tap k = dy*3 + dx  <->  spatial offsets (oy, ox) = (dy-1, dx-1)
OFFSETS = [(oy, ox) for oy in (-1, 0, 1) for ox in (-1, 0, 1)]


def _make_tap_mask(N, CP, H, W):
    """(9*CP, N*H*W) float32 validity mask for the 3x3 zero-padded conv.

    Row block k masks the lanes whose shifted source would fall outside the
    image (this also kills the roll's cross-image wraparound in the packed
    lane axis, since validity fails exactly at image boundaries)."""
    P = H * W
    NP = N * P
    lane = np.arange(NP)
    xc = lane % W
    yc = (lane // W) % H
    rows = []
    for oy, ox in OFFSETS:
        valid = ((yc + oy >= 0) & (yc + oy < H) &
                 (xc + ox >= 0) & (xc + ox < W)).astype(np.float32)
        rows.append(np.broadcast_to(valid[None, :], (CP, NP)))
    return jnp.asarray(np.concatenate(rows, axis=0))


def _make_kernel(N, CP, H, W):
    P = H * W
    NP = N * P          # total lanes (batch packed into the lane axis)

    def kernel(x_ref, m_ref, w1_ref, g1_ref, be1_ref,
               w2_ref, g2_ref, be2_ref, out_ref, s_ref):
        X = x_ref[...]                                   # (CP, NP), lane-dense

        def conv3x3(inp, w_ref):
            # Write each masked tap straight into the reused (9*CP, NP)
            # VMEM scratch, then do ONE MXU matmul: (CP,9*CP) @ (9*CP,NP).
            for k, (oy, ox) in enumerate(OFFSETS):
                lo = k * CP
                if oy == 0 and ox == 0:                  # center tap: identity
                    s_ref[lo:lo + CP, :] = inp
                else:
                    shift = (-(oy * W + ox)) % NP
                    t = pltpu.roll(inp, shift=shift, axis=1)
                    s_ref[lo:lo + CP, :] = t * m_ref[lo:lo + CP, :]
            return jnp.dot(w_ref[...], s_ref[...],
                           preferred_element_type=jnp.float32)

        def batchnorm(y, gamma, beta):
            # training-mode BN, biased batch stats, centered two-pass variance
            inv_n = 1.0 / NP
            mean = jnp.sum(y, axis=1, keepdims=True) * inv_n
            centered = y - mean
            var = jnp.sum(centered * centered, axis=1, keepdims=True) * inv_n
            scale = gamma * jax.lax.rsqrt(var + EPS)     # EUP rsqrt
            return centered * scale + beta

        # ---- stage 1: conv1 -> bn1 -> relu ----------------------------------
        y = conv3x3(X, w1_ref)
        y = jnp.maximum(batchnorm(y, g1_ref[...], be1_ref[...]), 0.0)

        # ---- stage 2: conv2 -> bn2 -> +identity -> relu ----------------------
        y = conv3x3(y, w2_ref)
        y = batchnorm(y, g2_ref[...], be2_ref[...]) + X
        out_ref[...] = jnp.maximum(y, 0.0)               # one unmasked store

    return kernel


def residual_block(x_nchw, params):
    """x_nchw: (N, C, H, W) float32, PyTorch-layout input (training-mode BN)."""
    N, C, H, W = x_nchw.shape
    CP = -(-C // 8) * 8                  # channels padded to a sublane multiple
    P = H * W
    NP = N * P

    # wrapper-side packing (free at this size): channel-pad, pack batch into
    # the lane axis -> (CP, N*H*W)
    xp = jnp.pad(x_nchw.astype(jnp.float32),
                 ((0, 0), (0, CP - C), (0, 0), (0, 0)))
    xl = jnp.transpose(xp.reshape(N, CP, P), (1, 0, 2)).reshape(CP, NP)

    mask = _make_tap_mask(N, CP, H, W)                   # (9*CP, NP)

    args = (xl, mask, params["w1"], params["g1"], params["be1"],
            params["w2"], params["g2"], params["be2"])

    out = pl.pallas_call(
        _make_kernel(N, CP, H, W),
        out_shape=jax.ShapeDtypeStruct((CP, NP), jnp.float32),
        in_specs=[pl.BlockSpec(memory_space=pltpu.MemorySpace.VMEM)] * len(args),
        out_specs=pl.BlockSpec(memory_space=pltpu.MemorySpace.VMEM),
        scratch_shapes=[pltpu.VMEM((9 * CP, NP), jnp.float32)],
    )(*args)

    # slice real channels and unpack lanes back to NCHW (free in the wrapper)
    return jnp.transpose(out[:C].reshape(C, N, P), (1, 0, 2)).reshape(N, C, H, W)


def init_params(key, C, CP):
    """Synthetic parameters mirroring a freshly-constructed ResidualBlock.

    Conv weights are stored MXU-ready as (CP, 9*CP) with
    w[co, k*CP + ci] = W_torch[co, ci, dy, dx], k = dy*3 + dx, zeros in padded
    channel slots.  Conv biases are generated (PyTorch has them) but NOT passed
    to the kernel: training-mode BatchNorm's batch-mean subtraction cancels a
    constant per-channel bias exactly.  BN: gamma=1, beta=0 (PyTorch default).
    """
    k0, k1, k2, k3 = jax.random.split(key, 4)
    bound = 1.0 / math.sqrt(C * 9)       # PyTorch conv default init bound
    wt1 = jax.random.uniform(k0, (C, C, 3, 3), jnp.float32, -bound, bound)
    b1 = jax.random.uniform(k1, (C,), jnp.float32, -bound, bound)
    wt2 = jax.random.uniform(k2, (C, C, 3, 3), jnp.float32, -bound, bound)
    b2 = jax.random.uniform(k3, (C,), jnp.float32, -bound, bound)

    def pack(wt):                        # [co, ci, dy, dx] -> (CP, 9*CP)
        wk = jnp.transpose(wt, (0, 2, 3, 1)).reshape(C, 9, C)   # [co, k, ci]
        wp = jnp.zeros((CP, 9, CP), jnp.float32).at[:C, :, :C].set(wk)
        return wp.reshape(CP, 9 * CP)

    gamma = jnp.ones((CP, 1), jnp.float32)
    beta = jnp.zeros((CP, 1), jnp.float32)
    return dict(w1=pack(wt1), w2=pack(wt2),
                g1=gamma, be1=beta, g2=gamma, be2=beta,
                # PyTorch-layout copies kept only for the pure-JAX reference:
                wt1=wt1, b1=b1, wt2=wt2, b2=b2)


def residual_block_ref(x, p):
    """Pure-JAX mirror of the PyTorch module's training-mode forward."""
    def conv(z, w, b):
        y = jax.lax.conv_general_dilated(
            z, w, window_strides=(1, 1), padding=((1, 1), (1, 1)),
            dimension_numbers=("NCHW", "OIHW", "NCHW"),
            precision=jax.lax.Precision.HIGHEST)
        return y + b[None, :, None, None]

    def bn(y):                           # gamma=1, beta=0, training-mode stats
        mean = jnp.mean(y, axis=(0, 2, 3), keepdims=True)
        var = jnp.mean((y - mean) ** 2, axis=(0, 2, 3), keepdims=True)
        return (y - mean) * jax.lax.rsqrt(var + EPS)

    out = jax.nn.relu(bn(conv(x, p["wt1"], p["b1"])))
    out = bn(conv(out, p["wt2"], p["b2"]))
    return jax.nn.relu(out + x)


if __name__ == "__main__":
    key = jax.random.PRNGKey(0)
    kx, kp = jax.random.split(key)

    N, C, H, W = 2, 4, 16, 16            # small NCHW input
    x = jax.random.normal(kx, (N, C, H, W), dtype=jnp.float32)
    CP = -(-C // 8) * 8
    params = init_params(kp, C, CP)

    out = jax.block_until_ready(residual_block(x, params))
    assert out.shape == (N, C, H, W)
    assert bool(jnp.all(out >= 0.0))     # final ReLU

    ref = jax.block_until_ready(residual_block_ref(x, params))
    np.testing.assert_allclose(np.asarray(out), np.asarray(ref),
                               rtol=1e-3, atol=1e-3)
    print("KERNEL_OK")
</pallas_src>

<mosaic_0001>
module attributes {stable_mosaic.version = 11 : i64} {
  func.func @kernel(%arg0: memref<8x512xf32, #tpu.memory_space<vmem>>, %arg1: memref<72x512xf32, #tpu.memory_space<vmem>>, %arg2: memref<8x72xf32, #tpu.memory_space<vmem>>, %arg3: memref<8x1xf32, #tpu.memory_space<vmem>>, %arg4: memref<8x1xf32, #tpu.memory_space<vmem>>, %arg5: memref<8x72xf32, #tpu.memory_space<vmem>>, %arg6: memref<8x1xf32, #tpu.memory_space<vmem>>, %arg7: memref<8x1xf32, #tpu.memory_space<vmem>>, %arg8: memref<8x512xf32, #tpu.memory_space<vmem>>, %arg9: memref<72x512xf32, #tpu.memory_space<vmem>>) attributes {dimension_semantics = [], scalar_prefetch = 0 : i64, scratch_operands = 1 : i64, tpu.core_type = #tpu.core_type<tc>} {
    %c0 = arith.constant 0 : index
    %c0_0 = arith.constant 0 : index
    %0 = vector.load %arg0[%c0, %c0_0] : memref<8x512xf32, #tpu.memory_space<vmem>>, vector<8x512xf32>
    %c17_i32 = arith.constant 17 : i32
    %1 = tpu.dynamic_rotate %0 by %c17_i32 dim 1 : vector<8x512xf32>, i32 -> vector<8x512xf32>
    %c0_1 = arith.constant 0 : index
    %c0_2 = arith.constant 0 : index
    %2 = vector.load %arg1[%c0_1, %c0_2] : memref<72x512xf32, #tpu.memory_space<vmem>>, vector<8x512xf32>
    %3 = arith.mulf %1, %2 : vector<8x512xf32>
    %c0_3 = arith.constant 0 : index
    %c0_4 = arith.constant 0 : index
    %4 = vector.load %arg9[%c0_3, %c0_4] : memref<72x512xf32, #tpu.memory_space<vmem>>, vector<8x512xf32>
    tpu.vector_store %arg9[%c0_3, %c0_4], %3 {strides = array<i32>} : memref<72x512xf32, #tpu.memory_space<vmem>>, vector<8x512xf32>,
    %c16_i32 = arith.constant 16 : i32
    %5 = tpu.dynamic_rotate %0 by %c16_i32 dim 1 : vector<8x512xf32>, i32 -> vector<8x512xf32>
    %c8 = arith.constant 8 : index
    %c0_5 = arith.constant 0 : index
    %6 = vector.load %arg1[%c8, %c0_5] : memref<72x512xf32, #tpu.memory_space<vmem>>, vector<8x512xf32>
    %7 = arith.mulf %5, %6 : vector<8x512xf32>
    %c8_6 = arith.constant 8 : index
    %c0_7 = arith.constant 0 : index
    %8 = vector.load %arg9[%c8_6, %c0_7] : memref<72x512xf32, #tpu.memory_space<vmem>>, vector<8x512xf32>
    tpu.vector_store %arg9[%c8_6, %c0_7], %7 {strides = array<i32>} : memref<72x512xf32, #tpu.memory_space<vmem>>, vector<8x512xf32>,
    %c15_i32 = arith.constant 15 : i32
    %9 = tpu.dynamic_rotate %0 by %c15_i32 dim 1 : vector<8x512xf32>, i32 -> vector<8x512xf32>
    %c16 = arith.constant 16 : index
    %c0_8 = arith.constant 0 : index
    %10 = vector.load %arg1[%c16, %c0_8] : memref<72x512xf32, #tpu.memory_space<vmem>>, vector<8x512xf32>
    %11 = arith.mulf %9, %10 : vector<8x512xf32>
    %c16_9 = arith.constant 16 : index
    %c0_10 = arith.constant 0 : index
    %12 = vector.load %arg9[%c16_9, %c0_10] : memref<72x512xf32, #tpu.memory_space<vmem>>, vector<8x512xf32>
    tpu.vector_store %arg9[%c16_9, %c0_10], %11 {strides = array<i32>} : memref<72x512xf32, #tpu.memory_space<vmem>>, vector<8x512xf32>,
    %c1_i32 = arith.constant 1 : i32
    %13 = tpu.dynamic_rotate %0 by %c1_i32 dim 1 : vector<8x512xf32>, i32 -> vector<8x512xf32>
    %c24 = arith.constant 24 : index
    %c0_11 = arith.constant 0 : index
    %14 = vector.load %arg1[%c24, %c0_11] : memref<72x512xf32, #tpu.memory_space<vmem>>, vector<8x512xf32>
    %15 = arith.mulf %13, %14 : vector<8x512xf32>
    %c24_12 = arith.constant 24 : index
    %c0_13 = arith.constant 0 : index
    %16 = vector.load %arg9[%c24_12, %c0_13] : memref<72x512xf32, #tpu.memory_space<vmem>>, vector<8x512xf32>
    tpu.vector_store %arg9[%c24_12, %c0_13], %15 {strides = array<i32>} : memref<72x512xf32, #tpu.memory_space<vmem>>, vector<8x512xf32>,
    %c32 = arith.constant 32 : index
    %c0_14 = arith.constant 0 : index
    %17 = vector.load %arg9[%c32, %c0_14] : memref<72x512xf32, #tpu.memory_space<vmem>>, vector<8x512xf32>
    tpu.vector_store %arg9[%c32, %c0_14], %0 {strides = array<i32>} : memref<72x512xf32, #tpu.memory_space<vmem>>, vector<8x512xf32>,
    %c511_i32 = arith.constant 511 : i32
    %18 = tpu.dynamic_rotate %0 by %c511_i32 dim 1 : vector<8x512xf32>, i32 -> vector<8x512xf32>
    %c40 = arith.constant 40 : index
    %c0_15 = arith.constant 0 : index
    %19 = vector.load %arg1[%c40, %c0_15] : memref<72x512xf32, #tpu.memory_space<vmem>>, vector<8x512xf32>
    %20 = arith.mulf %18, %19 : vector<8x512xf32>
    %c40_16 = arith.constant 40 : index
    %c0_17 = arith.constant 0 : index
    %21 = vector.load %arg9[%c40_16, %c0_17] : memref<72x512xf32, #tpu.memory_space<vmem>>, vector<8x512xf32>
    tpu.vector_store %arg9[%c40_16, %c0_17], %20 {strides = array<i32>} : memref<72x512xf32, #tpu.memory_space<vmem>>, vector<8x512xf32>,
    %c497_i32 = arith.constant 497 : i32
    %22 = tpu.dynamic_rotate %0 by %c497_i32 dim 1 : vector<8x512xf32>, i32 -> vector<8x512xf32>
    %c48 = arith.constant 48 : index
    %c0_18 = arith.constant 0 : index
    %23 = vector.load %arg1[%c48, %c0_18] : memref<72x512xf32, #tpu.memory_space<vmem>>, vector<8x512xf32>
    %24 = arith.mulf %22, %23 : vector<8x512xf32>
    %c48_19 = arith.constant 48 : index
    %c0_20 = arith.constant 0 : index
    %25 = vector.load %arg9[%c48_19, %c0_20] : memref<72x512xf32, #tpu.memory_space<vmem>>, vector<8x512xf32>
    tpu.vector_store %arg9[%c48_19, %c0_20], %24 {strides = array<i32>} : memref<72x512xf32, #tpu.memory_space<vmem>>, vector<8x512xf32>,
    %c496_i32 = arith.constant 496 : i32
    %26 = tpu.dynamic_rotate %0 by %c496_i32 dim 1 : vector<8x512xf32>, i32 -> vector<8x512xf32>
    %c56 = arith.constant 56 : index
    %c0_21 = arith.constant 0 : index
    %27 = vector.load %arg1[%c56, %c0_21] : memref<72x512xf32, #tpu.memory_space<vmem>>, vector<8x512xf32>
    %28 = arith.mulf %26, %27 : vector<8x512xf32>
    %c56_22 = arith.constant 56 : index
    %c0_23 = arith.constant 0 : index
    %29 = vector.load %arg9[%c56_22, %c0_23] : memref<72x512xf32, #tpu.memory_space<vmem>>, vector<8x512xf32>
    tpu.vector_store %arg9[%c56_22, %c0_23], %28 {strides = array<i32>} : memref<72x512xf32, #tpu.memory_space<vmem>>, vector<8x512xf32>,
    %c495_i32 = arith.constant 495 : i32
    %30 = tpu.dynamic_rotate %0 by %c495_i32 dim 1 : vector<8x512xf32>, i32 -> vector<8x512xf32>
    %c64 = arith.constant 64 : index
    %c0_24 = arith.constant 0 : index
    %31 = vector.load %arg1[%c64, %c0_24] : memref<72x512xf32, #tpu.memory_space<vmem>>, vector<8x512xf32>
    %32 = arith.mulf %30, %31 : vector<8x512xf32>
    %c64_25 = arith.constant 64 : index
    %c0_26 = arith.constant 0 : index
    %33 = vector.load %arg9[%c64_25, %c0_26] : memref<72x512xf32, #tpu.memory_space<vmem>>, vector<8x512xf32>
    tpu.vector_store %arg9[%c64_25, %c0_26], %32 {strides = array<i32>} : memref<72x512xf32, #tpu.memory_space<vmem>>, vector<8x512xf32>,
    %c0_27 = arith.constant 0 : index
    %c0_28 = arith.constant 0 : index
    %34 = vector.load %arg2[%c0_27, %c0_28] : memref<8x72xf32, #tpu.memory_space<vmem>>, vector<8x72xf32>
    %c0_29 = arith.constant 0 : index
    %c0_30 = arith.constant 0 : index
    %35 = vector.load %arg9[%c0_29, %c0_30] : memref<72x512xf32, #tpu.memory_space<vmem>>, vector<72x512xf32>
    %cst = arith.constant dense<0.000000e+00> : vector<8x512xf32>
    %36 = tpu.matmul %34, %35, %cst {dimension_numbers = #tpu.dot_dimension_numbers<[1], [0], [0], [1], [0, 0, 1, 1], [], []>} : vector<8x72xf32>, vector<72x512xf32>, vector<8x512xf32> -> vector<8x512xf32>
    %c0_31 = arith.constant 0 : index
    %c0_32 = arith.constant 0 : index
    %37 = vector.load %arg3[%c0_31, %c0_32] : memref<8x1xf32, #tpu.memory_space<vmem>>, vector<8x1xf32>
    %c0_33 = arith.constant 0 : index
    %c0_34 = arith.constant 0 : index
    %38 = vector.load %arg4[%c0_33, %c0_34] : memref<8x1xf32, #tpu.memory_space<vmem>>, vector<8x1xf32>
    %cst_35 = arith.constant dense<0.000000e+00> : vector<8xf32>
    %39 = vector.multi_reduction <add>, %36, %cst_35 [1] : vector<8x512xf32> to vector<8xf32>
    %40 = vector.shape_cast %39 : vector<8xf32> to vector<8x1xf32>
    %cst_36 = arith.constant 0.001953125 : f32
    %41 = vector.broadcast %cst_36 : f32 to vector<8x1xf32>
    %42 = arith.mulf %40, %41 : vector<8x1xf32>
    %43 = vector.broadcast %42 : vector<8x1xf32> to vector<8x512xf32>
    %44 = arith.subf %36, %43 : vector<8x512xf32>
    %45 = arith.mulf %44, %44 : vector<8x512xf32>
    %cst_37 = arith.constant dense<0.000000e+00> : vector<8xf32>
    %46 = vector.multi_reduction <add>, %45, %cst_37 [1] : vector<8x512xf32> to vector<8xf32>
    %47 = vector.shape_cast %46 : vector<8xf32> to vector<8x1xf32>
    %cst_38 = arith.constant 0.001953125 : f32
    %48 = vector.broadcast %cst_38 : f32 to vector<8x1xf32>
    %49 = arith.mulf %47, %48 : vector<8x1xf32>
    %cst_39 = arith.constant 9.99999974E-6 : f32
    %50 = vector.broadcast %cst_39 : f32 to vector<8x1xf32>
    %51 = arith.addf %49, %50 : vector<8x1xf32>
    %52 = math.rsqrt %51 : vector<8x1xf32>
    %53 = arith.mulf %37, %52 : vector<8x1xf32>
    %54 = vector.broadcast %53 : vector<8x1xf32> to vector<8x512xf32>
    %55 = arith.mulf %44, %54 : vector<8x512xf32>
    %56 = vector.broadcast %38 : vector<8x1xf32> to vector<8x512xf32>
    %57 = arith.addf %55, %56 : vector<8x512xf32>
    %cst_40 = arith.constant 0.000000e+00 : f32
    %58 = vector.broadcast %cst_40 : f32 to vector<8x512xf32>
    %59 = arith.maximumf %57, %58 : vector<8x512xf32>
    %c17_i32_41 = arith.constant 17 : i32
    %60 = tpu.dynamic_rotate %59 by %c17_i32_41 dim 1 : vector<8x512xf32>, i32 -> vector<8x512xf32>
    %c0_42 = arith.constant 0 : index
    %c0_43 = arith.constant 0 : index
    %61 = vector.load %arg1[%c0_42, %c0_43] : memref<72x512xf32, #tpu.memory_space<vmem>>, vector<8x512xf32>
    %62 = arith.mulf %60, %61 : vector<8x512xf32>
    %c0_44 = arith.constant 0 : index
    %c0_45 = arith.constant 0 : index
    %63 = vector.load %arg9[%c0_44, %c0_45] : memref<72x512xf32, #tpu.memory_space<vmem>>, vector<8x512xf32>
    tpu.vector_store %arg9[%c0_44, %c0_45], %62 {strides = array<i32>} : memref<72x512xf32, #tpu.memory_space<vmem>>, vector<8x512xf32>,
    %c16_i32_46 = arith.constant 16 : i32
    %64 = tpu.dynamic_rotate %59 by %c16_i32_46 dim 1 : vector<8x512xf32>, i32 -> vector<8x512xf32>
    %c8_47 = arith.constant 8 : index
    %c0_48 = arith.constant 0 : index
    %65 = vector.load %arg1[%c8_47, %c0_48] : memref<72x512xf32, #tpu.memory_space<vmem>>, vector<8x512xf32>
    %66 = arith.mulf %64, %65 : vector<8x512xf32>
    %c8_49 = arith.constant 8 : index
    %c0_50 = arith.constant 0 : index
    %67 = vector.load %arg9[%c8_49, %c0_50] : memref<72x512xf32, #tpu.memory_space<vmem>>, vector<8x512xf32>
    tpu.vector_store %arg9[%c8_49, %c0_50], %66 {strides = array<i32>} : memref<72x512xf32, #tpu.memory_space<vmem>>, vector<8x512xf32>,
    %c15_i32_51 = arith.constant 15 : i32
    %68 = tpu.dynamic_rotate %59 by %c15_i32_51 dim 1 : vector<8x512xf32>, i32 -> vector<8x512xf32>
    %c16_52 = arith.constant 16 : index
    %c0_53 = arith.constant 0 : index
    %69 = vector.load %arg1[%c16_52, %c0_53] : memref<72x512xf32, #tpu.memory_space<vmem>>, vector<8x512xf32>
    %70 = arith.mulf %68, %69 : vector<8x512xf32>
    %c16_54 = arith.constant 16 : index
    %c0_55 = arith.constant 0 : index
    %71 = vector.load %arg9[%c16_54, %c0_55] : memref<72x512xf32, #tpu.memory_space<vmem>>, vector<8x512xf32>
    tpu.vector_store %arg9[%c16_54, %c0_55], %70 {strides = array<i32>} : memref<72x512xf32, #tpu.memory_space<vmem>>, vector<8x512xf32>,
    %c1_i32_56 = arith.constant 1 : i32
    %72 = tpu.dynamic_rotate %59 by %c1_i32_56 dim 1 : vector<8x512xf32>, i32 -> vector<8x512xf32>
    %c24_57 = arith.constant 24 : index
    %c0_58 = arith.constant 0 : index
    %73 = vector.load %arg1[%c24_57, %c0_58] : memref<72x512xf32, #tpu.memory_space<vmem>>, vector<8x512xf32>
    %74 = arith.mulf %72, %73 : vector<8x512xf32>
    %c24_59 = arith.constant 24 : index
    %c0_60 = arith.constant 0 : index
    %75 = vector.load %arg9[%c24_59, %c0_60] : memref<72x512xf32, #tpu.memory_space<vmem>>, vector<8x512xf32>
    tpu.vector_store %arg9[%c24_59, %c0_60], %74 {strides = array<i32>} : memref<72x512xf32, #tpu.memory_space<vmem>>, vector<8x512xf32>,
    %c32_61 = arith.constant 32 : index
    %c0_62 = arith.constant 0 : index
    %76 = vector.load %arg9[%c32_61, %c0_62] : memref<72x512xf32, #tpu.memory_space<vmem>>, vector<8x512xf32>
    tpu.vector_store %arg9[%c32_61, %c0_62], %59 {strides = array<i32>} : memref<72x512xf32, #tpu.memory_space<vmem>>, vector<8x512xf32>,
    %c511_i32_63 = arith.constant 511 : i32
    %77 = tpu.dynamic_rotate %59 by %c511_i32_63 dim 1 : vector<8x512xf32>, i32 -> vector<8x512xf32>
    %c40_64 = arith.constant 40 : index
    %c0_65 = arith.constant 0 : index
    %78 = vector.load %arg1[%c40_64, %c0_65] : memref<72x512xf32, #tpu.memory_space<vmem>>, vector<8x512xf32>
    %79 = arith.mulf %77, %78 : vector<8x512xf32>
    %c40_66 = arith.constant 40 : index
    %c0_67 = arith.constant 0 : index
    %80 = vector.load %arg9[%c40_66, %c0_67] : memref<72x512xf32, #tpu.memory_space<vmem>>, vector<8x512xf32>
    tpu.vector_store %arg9[%c40_66, %c0_67], %79 {strides = array<i32>} : memref<72x512xf32, #tpu.memory_space<vmem>>, vector<8x512xf32>,
    %c497_i32_68 = arith.constant 497 : i32
    %81 = tpu.dynamic_rotate %59 by %c497_i32_68 dim 1 : vector<8x512xf32>, i32 -> vector<8x512xf32>
    %c48_69 = arith.constant 48 : index
    %c0_70 = arith.constant 0 : index
    %82 = vector.load %arg1[%c48_69, %c0_70] : memref<72x512xf32, #tpu.memory_space<vmem>>, vector<8x512xf32>
    %83 = arith.mulf %81, %82 : vector<8x512xf32>
    %c48_71 = arith.constant 48 : index
    %c0_72 = arith.constant 0 : index
    %84 = vector.load %arg9[%c48_71, %c0_72] : memref<72x512xf32, #tpu.memory_space<vmem>>, vector<8x512xf32>
    tpu.vector_store %arg9[%c48_71, %c0_72], %83 {strides = array<i32>} : memref<72x512xf32, #tpu.memory_space<vmem>>, vector<8x512xf32>,
    %c496_i32_73 = arith.constant 496 : i32
    %85 = tpu.dynamic_rotate %59 by %c496_i32_73 dim 1 : vector<8x512xf32>, i32 -> vector<8x512xf32>
    %c56_74 = arith.constant 56 : index
    %c0_75 = arith.constant 0 : index
    %86 = vector.load %arg1[%c56_74, %c0_75] : memref<72x512xf32, #tpu.memory_space<vmem>>, vector<8x512xf32>
    %87 = arith.mulf %85, %86 : vector<8x512xf32>
    %c56_76 = arith.constant 56 : index
    %c0_77 = arith.constant 0 : index
    %88 = vector.load %arg9[%c56_76, %c0_77] : memref<72x512xf32, #tpu.memory_space<vmem>>, vector<8x512xf32>
    tpu.vector_store %arg9[%c56_76, %c0_77], %87 {strides = array<i32>} : memref<72x512xf32, #tpu.memory_space<vmem>>, vector<8x512xf32>,
    %c495_i32_78 = arith.constant 495 : i32
    %89 = tpu.dynamic_rotate %59 by %c495_i32_78 dim 1 : vector<8x512xf32>, i32 -> vector<8x512xf32>
    %c64_79 = arith.constant 64 : index
    %c0_80 = arith.constant 0 : index
    %90 = vector.load %arg1[%c64_79, %c0_80] : memref<72x512xf32, #tpu.memory_space<vmem>>, vector<8x512xf32>
    %91 = arith.mulf %89, %90 : vector<8x512xf32>
    %c64_81 = arith.constant 64 : index
    %c0_82 = arith.constant 0 : index
    %92 = vector.load %arg9[%c64_81, %c0_82] : memref<72x512xf32, #tpu.memory_space<vmem>>, vector<8x512xf32>
    tpu.vector_store %arg9[%c64_81, %c0_82], %91 {strides = array<i32>} : memref<72x512xf32, #tpu.memory_space<vmem>>, vector<8x512xf32>,
    %c0_83 = arith.constant 0 : index
    %c0_84 = arith.constant 0 : index
    %93 = vector.load %arg5[%c0_83, %c0_84] : memref<8x72xf32, #tpu.memory_space<vmem>>, vector<8x72xf32>
    %c0_85 = arith.constant 0 : index
    %c0_86 = arith.constant 0 : index
    %94 = vector.load %arg9[%c0_85, %c0_86] : memref<72x512xf32, #tpu.memory_space<vmem>>, vector<72x512xf32>
    %cst_87 = arith.constant dense<0.000000e+00> : vector<8x512xf32>
    %95 = tpu.matmul %93, %94, %cst_87 {dimension_numbers = #tpu.dot_dimension_numbers<[1], [0], [0], [1], [0, 0, 1, 1], [], []>} : vector<8x72xf32>, vector<72x512xf32>, vector<8x512xf32> -> vector<8x512xf32>
    %c0_88 = arith.constant 0 : index
    %c0_89 = arith.constant 0 : index
    %96 = vector.load %arg6[%c0_88, %c0_89] : memref<8x1xf32, #tpu.memory_space<vmem>>, vector<8x1xf32>
    %c0_90 = arith.constant 0 : index
    %c0_91 = arith.constant 0 : index
    %97 = vector.load %arg7[%c0_90, %c0_91] : memref<8x1xf32, #tpu.memory_space<vmem>>, vector<8x1xf32>
    %cst_92 = arith.constant dense<0.000000e+00> : vector<8xf32>
    %98 = vector.multi_reduction <add>, %95, %cst_92 [1] : vector<8x512xf32> to vector<8xf32>
    %99 = vector.shape_cast %98 : vector<8xf32> to vector<8x1xf32>
    %cst_93 = arith.constant 0.001953125 : f32
    %100 = vector.broadcast %cst_93 : f32 to vector<8x1xf32>
    %101 = arith.mulf %99, %100 : vector<8x1xf32>
    %102 = vector.broadcast %101 : vector<8x1xf32> to vector<8x512xf32>
    %103 = arith.subf %95, %102 : vector<8x512xf32>
    %104 = arith.mulf %103, %103 : vector<8x512xf32>
    %cst_94 = arith.constant dense<0.000000e+00> : vector<8xf32>
    %105 = vector.multi_reduction <add>, %104, %cst_94 [1] : vector<8x512xf32> to vector<8xf32>
    %106 = vector.shape_cast %105 : vector<8xf32> to vector<8x1xf32>
    %cst_95 = arith.constant 0.001953125 : f32
    %107 = vector.broadcast %cst_95 : f32 to vector<8x1xf32>
    %108 = arith.mulf %106, %107 : vector<8x1xf32>
    %cst_96 = arith.constant 9.99999974E-6 : f32
    %109 = vector.broadcast %cst_96 : f32 to vector<8x1xf32>
    %110 = arith.addf %108, %109 : vector<8x1xf32>
    %111 = math.rsqrt %110 : vector<8x1xf32>
    %112 = arith.mulf %96, %111 : vector<8x1xf32>
    %113 = vector.broadcast %112 : vector<8x1xf32> to vector<8x512xf32>
    %114 = arith.mulf %103, %113 : vector<8x512xf32>
    %115 = vector.broadcast %97 : vector<8x1xf32> to vector<8x512xf32>
    %116 = arith.addf %114, %115 : vector<8x512xf32>
    %117 = arith.addf %116, %0 : vector<8x512xf32>
    %cst_97 = arith.constant 0.000000e+00 : f32
    %118 = vector.broadcast %cst_97 : f32 to vector<8x512xf32>
    %119 = arith.maximumf %117, %118 : vector<8x512xf32>
    %c0_98 = arith.constant 0 : index
    %c0_99 = arith.constant 0 : index
    %120 = vector.load %arg8[%c0_98, %c0_99] : memref<8x512xf32, #tpu.memory_space<vmem>>, vector<8x512xf32>
    tpu.vector_store %arg8[%c0_98, %c0_99], %119 {strides = array<i32>} : memref<8x512xf32, #tpu.memory_space<vmem>>, vector<8x512xf32>,
    return
  }
}

</mosaic_0001>

<bundles_post_ra>
// kernel: tpu_custom_call.1
= control target key start
LH: loop header
LB: loop body
LE: loop exit
PB: predicated region body
PF: predicated region fallthrough
CT: control target
= control target key end

     0   :  { %13 = vsyncpa [#allocation4], 0  ;;  %s1475_s0 = inlined_call_operand.hbm [shape: f32[8,512], index: 0, kind: input, shape index: {}]   ;;  %s1476_s1 = inlined_call_operand.hbm [shape: f32[72,512], index: 1, kind: input, shape index: {}]   ;;  %s1477_s2 = inlined_call_operand.vmem [shape: f32[8,72], index: 2, kind: input, shape index: {}]   ;;  %s1478_s3 = inlined_call_operand.vmem [shape: f32[8,1], index: 3, kind: input, shape index: {}]   ;;  %s1479_s4 = inlined_call_operand.vmem [shape: f32[8,1], index: 4, kind: input, shape index: {}]   ;;  %s1480_s5 = inlined_call_operand.vmem [shape: f32[8,72], index: 5, kind: input, shape index: {}]   ;;  %s1481_s6 = inlined_call_operand.vmem [shape: f32[8,1], index: 6, kind: input, shape index: {}]   ;;  %s1482_s7 = inlined_call_operand.vmem [shape: f32[8,1], index: 7, kind: input, shape index: {}]   ;;  %s1483_s8 = inlined_call_operand.hbm [shape: f32[8,512], index: 8, kind: output, shape index: {}]  }
   0x1   :  { %14 = vsyncpa [#allocation7], 0 }
   0x2   :  { %15 = vsyncpa [#allocation5], 0  ;;  %s21_s29 = sshll.u32 %s1475_s0, 4  ;;  %s951_s30 = smov [#allocation3]   ;;  %s22_s29 = int_to_ptr.hbm [resolvable:$true] %s21_s29 }
   0x3   :  { %s23_s9 = sshll.u32 %s951_s30, 4  ;;  %s31_s12 = sshll.u32 %s1476_s1, 4  ;;  %s24_s9 = int_to_ptr.vmem [resolvable:$true] %s23_s9  ;;  %s32_s12 = int_to_ptr.hbm [resolvable:$true] %s31_s12 }
   0x4   :  { %26 = dma.hbm_to_vmem [thread:$0]  %s22_s29, 512, %s24_s9, [#allocation4]  }
   0x5   :  { %s952_s13 = smov [#allocation6]   ;;  %s953_s15 = smov 512  }
   0x6   :  { %s33_s14 = sshll.u32 %s952_s13, 4  ;;  %s954_s16 = smov 32   ;;  %s34_s14 = int_to_ptr.vmem [resolvable:$true] %s33_s14 }
   0x7   :  { %39 = dma.hbm_to_vmem [thread:$0]  %s32_s12, 4608, %s34_s14, [#allocation7], %s953_s15, %s953_s15, %s954_s16  }
   0x8   :  { %945 = dma.done.wait [#allocation4], 512  }
   0x9   :  { %946 = vsyncadd [#allocation4], 4294966784 }
   0xa   :  { %947 = dma.done.wait [#allocation7], 4608  }
   0xb   :  { %948 = vsyncadd [#allocation7], 4294962688  ;;  %v1016_v0 = vld [vmem:[#allocation3 + $0x10] sm:$0xff]  ;;  %v1018_v1 = vld [vmem:[#allocation3] sm:$0xff]  ;;  %s955_s0 = smov 112   ;;  %s956_s1 = smov 111   ;;  %v72_v6 = vlaneseq }
   0xc   :  { %224 = vrot.lane.b32.xlu1 %v1016_v0, %s955_s0  ;;  %249 = vrot.lane.b32.xlu0 %v1016_v0, %s956_s1  ;;  %v1026_v2 = vld [vmem:[#allocation3 + $0x18] sm:$0xff]  ;;  %s957_s17 = smov 113   ;;  %v1034_v3 = vld [vmem:[#allocation3 + $0x8] sm:$0xff]  ;;  %s958_s18 = smov 127   ;;  %v1090_v8 = vld [vmem:[#allocation6 + $0x100] sm:$0xff]  ;;  %vm307_vm8 = vcmask 588800  }
   0xd   :  { %245 = vrot.lane.b32.xlu2 %v1018_v1, %s956_s1  ;;  %s959_s19 = smov 1   ;;  %s960_s20 = smov 15   ;;  %v1088_v7 = vand.u32 127, %v72_v6  ;;  %v1096_v12 = vld [vmem:[#allocation6 + $0x108] sm:$0xff]  ;;  %v1102_v18 = vld [vmem:[#allocation6 + $0x110] sm:$0xff]  ;;  %v1104_v19 = vld [vmem:[#allocation6 + $0x118] sm:$0xff] }
   0xe   :  { %s961_s21 = smov 16   ;;  %s962_s22 = smov 17   ;;  %v1112_v25 = vld [vmem:[#allocation6 + $0xf0] sm:$0xff]  ;;  %v1120_v30 = vld [vmem:[#allocation6 + $0xf8] sm:$0xff]  ;;  %v1140_v47 = vld [vmem:[#allocation6 + $0xe0] sm:$0xff] }
   0xf   :  { %vm253_vm0 = vcmp.lt.s32.totalorder %v1088_v7, 111  ;;  %vm228_vm1 = vcmp.lt.s32.totalorder %v1088_v7, 112  ;;  %vm203_vm2 = vcmp.lt.s32.totalorder %v1088_v7, 113  ;;  %v1118_v29 = vld [vmem:[#allocation6 + $0xd0] sm:$0xff]  ;;  %v1128_v36 = vld [vmem:[#allocation6 + $0xd8] sm:$0xff]  ;;  %vm178_vm3 = vcmp.lt.s32.totalorder %v1088_v7, 127 }
  0x10   :  { %v1134_v41 = vld [vmem:[#allocation6 + $0xb0] sm:$0xff]  ;;  %v1142_v48 = vld [vmem:[#allocation6 + $0xe8] sm:$0xff]  ;;  %v1144_v49 = vld [vmem:[#allocation6 + $0xb8] sm:$0xff]  ;;  %vm149_vm4 = vcmp.lt.s32.totalorder %v1088_v7, 1  ;;  %vm124_vm5 = vcmp.lt.s32.totalorder %v1088_v7, 15  ;;  %vm99_vm6 = vcmp.lt.s32.totalorder %v1088_v7, 16 }
  0x11   :  { %v1156_v57 = vld [vmem:[#allocation6 + $0xc0] sm:$0xff]  ;;  %v1158_v58 = vld [vmem:[#allocation6 + $0xc8] sm:$0xff]  ;;  %vm74_vm7 = vcmp.lt.s32.totalorder %v1088_v7, 17  ;;  %s834_s11 = sshll.u32 %s1483_s8, 4  ;;  %s835_s11 = int_to_ptr.hbm [resolvable:$true] %s834_s11 }
  0x14   :  { %226 = vrot.lane.b32.xlu1 %v1026_v2, %s955_s0  ;;  %251 = vrot.lane.b32.xlu0 %v1026_v2, %s956_s1 }
  0x15   :  { %199 = vrot.lane.b32.xlu2 %v1016_v0, %s957_s17 }
  0x1c   :  { %201 = vrot.lane.b32.xlu0 %v1026_v2, %s957_s17  ;;  %220 = vrot.lane.b32.xlu1 %v1018_v1, %s955_s0 }
  0x1d   :  { %247 = vrot.lane.b32.xlu2 %v1034_v3, %s956_s1 }
  0x24   :  { %174 = vrot.lane.b32.xlu0 %v1016_v0, %s958_s18  ;;  %176 = vrot.lane.b32.xlu1 %v1026_v2, %s958_s18 }
  0x25   :  { %195 = vrot.lane.b32.xlu2 %v1018_v1, %s957_s17 }
  0x2c   :  { %222 = vrot.lane.b32.xlu0 %v1034_v3, %s955_s0  ;;  %170 = vrot.lane.b32.xlu1 %v1018_v1, %s958_s18 }
  0x2d   :  { %197 = vrot.lane.b32.xlu2 %v1034_v3, %s957_s17 }
  0x34   :  { %143 = vrot.lane.b32.xlu0 %v1034_v3, %s959_s19  ;;  %145 = vrot.lane.b32.xlu1 %v1016_v0, %s959_s19 }
  0x35   :  { %172 = vrot.lane.b32.xlu2 %v1034_v3, %s958_s18 }
  0x3c   :  { %118 = vrot.lane.b32.xlu0 %v1034_v3, %s960_s20  ;;  %120 = vrot.lane.b32.xlu1 %v1016_v0, %s960_s20 }
  0x3d   :  { %147 = vrot.lane.b32.xlu2 %v1026_v2, %s959_s19 }
  0x44   :  { %93 = vrot.lane.b32.xlu0 %v1034_v3, %s961_s21  ;;  %95 = vrot.lane.b32.xlu1 %v1016_v0, %s961_s21 }
  0x45   :  { %122 = vrot.lane.b32.xlu2 %v1026_v2, %s960_s20 }
  0x4c   :  { %141 = vrot.lane.b32.xlu0 %v1018_v1, %s959_s19  ;;  %66 = vrot.lane.b32.xlu1 %v1034_v3, %s962_s22 }
  0x4d   :  { %68 = vrot.lane.b32.xlu2 %v1016_v0, %s962_s22 }
  0x54   :  { %97 = vrot.lane.b32.xlu0 %v1026_v2, %s961_s21  ;;  %116 = vrot.lane.b32.xlu1 %v1018_v1, %s960_s20 }
  0x55   :  { %70 = vrot.lane.b32.xlu2 %v1026_v2, %s962_s22 }
  0x5c   :  { %91 = vrot.lane.b32.xlu0 %v1018_v1, %s961_s21  ;;  %64 = vrot.lane.b32.xlu1 %v1018_v1, %s962_s22 }
  0x67   :  { %v246_v4 = vpop.permute.xlu2 %245 }
  0x6f   :  { %v200_v5 = vpop.permute.xlu2 %199 }
  0x77   :  { %v248_v9 = vpop.permute.xlu2 %247 }
  0x78   :  { %v256_v10 = vsel %vm253_vm0, %v246_v4, %v248_v9 }
  0x79   :  { %v262_v11 = vmul.f32 %v1090_v8, %v256_v10 }
  0x7b   :  { %318 = vmatpush.msra.mxu0 %v262_v11 }
  0x7e   :  { %v225_v13 = vpop.permute.xlu1 %224  ;;  %v250_v14 = vpop.permute.xlu0 %249 }
  0x7f   :  { %v255_v15 = vsel %vm253_vm0, %v248_v9, %v250_v14  ;;  %v196_v17 = vpop.permute.xlu2 %195 }
  0x80   :  { %v263_v16 = vmul.f32 %v1096_v12, %v255_v15  ;;  %v1179_v15 = vld [vmem:[#allocation6 + $0x78] sm:$0xff] }
  0x82   :  { %338 = vmatpush.msra.mxu1 %v263_v16 }
  0x86   :  { %v227_v20 = vpop.permute.xlu1 %226  ;;  %v252_v21 = vpop.permute.xlu0 %251 }
  0x87   :  { %v229_v22 = vsel %vm228_vm1, %v225_v13, %v227_v20  ;;  %v254_v23 = vsel %vm253_vm0, %v250_v14, %v252_v21  ;;  %v257_v24 = vsel %vm253_vm0, %v252_v21, %v246_v4  ;;  %v198_v37 = vpop.permute.xlu2 %197  ;;  %v1167_v4 = vld [vmem:[#allocation6 + $0xa0] sm:$0xff]  ;;  %v1176_v14 = vld [vmem:[#allocation6 + $0x70] sm:$0xff] }
  0x88   :  { %v264_v26 = vmul.f32 %v1102_v18, %v254_v23  ;;  %v265_v27 = vmul.f32 %v1104_v19, %v257_v24  ;;  %v239_v28 = vmul.f32 %v1112_v25, %v229_v22  ;;  %v205_v50 = vsel %vm203_vm2, %v198_v37, %v200_v5 }
  0x89   :  { %v206_v53 = vsel %vm203_vm2, %v196_v17, %v198_v37  ;;  %v213_v9 = vmul.f32 %v1158_v58, %v205_v50  ;;  %v1201_v37 = vld [vmem:[#allocation6 + $0x30] sm:$0xff] }
  0x8a   :  { %358 = vmatpush.msra.mxu2 %v264_v26  ;;  %378 = vmatpush.msra.mxu3 %v265_v27  ;;  %v212_v6 = vmul.f32 %v1156_v57, %v206_v53  ;;  %v1190_v26 = vld [vmem:[#allocation6 + $0x50] sm:$0xff]  ;;  %v1192_v27 = vld [vmem:[#allocation6 + $0x58] sm:$0xff] }
  0x8c   :  { %359 = vmatpush.msra.mxu2 %v239_v28 }
  0x8e   :  { %v202_v31 = vpop.permute.xlu0 %201  ;;  %v221_v32 = vpop.permute.xlu1 %220 }
  0x8f   :  { %v204_v33 = vsel %vm203_vm2, %v200_v5, %v202_v31  ;;  %v207_v34 = vsel %vm203_vm2, %v202_v31, %v196_v17  ;;  %v232_v35 = vsel %vm228_vm1, %v227_v20, %v221_v32  ;;  %v173_v46 = vpop.permute.xlu2 %172  ;;  %v1169_v5 = vld [vmem:[#allocation6 + $0xa8] sm:$0xff] }
  0x90   :  { %v214_v38 = vmul.f32 %v1118_v29, %v204_v33  ;;  %v240_v39 = vmul.f32 %v1120_v30, %v232_v35  ;;  %v215_v40 = vmul.f32 %v1128_v36, %v207_v34 }
  0x92   :  { %360 = vmatpush.msra.mxu2 %v214_v38  ;;  %379 = vmatpush.msra.mxu3 %v240_v39 }
  0x94   :  { %380 = vmatpush.msra.mxu3 %v215_v40 }
  0x96   :  { %v175_v42 = vpop.permute.xlu0 %174  ;;  %v177_v43 = vpop.permute.xlu1 %176 }
  0x97   :  { %v179_v44 = vsel %vm178_vm3, %v175_v42, %v177_v43  ;;  %v180_v62 = vsel %vm178_vm3, %v173_v46, %v175_v42  ;;  %v148_v10 = vpop.permute.xlu2 %147 }
  0x98   :  { %v189_v45 = vmul.f32 %v1134_v41, %v179_v44  ;;  %v1207_v44 = vld [vmem:[#allocation6 + $0x60] sm:$0xff] }
  0x9a   :  { %361 = vmatpush.msra.mxu2 %v189_v45  ;;  %v1209_v45 = vld [vmem:[#allocation6 + $0x68] sm:$0xff] }
  0x9c   :  { %362 = vmatpush.msra.mxu2 %v1016_v0 }
  0x9e   :  { %v223_v51 = vpop.permute.xlu0 %222  ;;  %v171_v52 = vpop.permute.xlu1 %170 }
  0x9f   :  { %v230_v54 = vsel %vm228_vm1, %v223_v51, %v225_v13  ;;  %v231_v55 = vsel %vm228_vm1, %v221_v32, %v223_v51  ;;  %v182_v56 = vsel %vm178_vm3, %v177_v43, %v171_v52  ;;  %v181_v63 = vsel %vm178_vm3, %v171_v52, %v173_v46  ;;  %v123_v24 = vpop.permute.xlu2 %122  ;;  %v1211_v46 = vld [vmem:[#allocation6 + $0x10] sm:$0xff] }
  0xa0   :  { %v237_v59 = vmul.f32 %v1140_v47, %v231_v55  ;;  %v238_v60 = vmul.f32 %v1142_v48, %v230_v54  ;;  %v190_v61 = vmul.f32 %v1144_v49, %v182_v56  ;;  %v187_v11 = vmul.f32 %v1167_v4, %v181_v63  ;;  %v1228_v63 = vld [vmem:[#allocation6 + $0x48] sm:$0xff] }
  0xa1   :  { %v188_v13 = vmul.f32 %v1169_v5, %v180_v62  ;;  %v1226_v62 = vld [vmem:[#allocation6 + $0x40] sm:$0xff] }
  0xa2   :  { %319 = vmatpush.msra.mxu0 %v237_v59  ;;  %339 = vmatpush.msra.mxu1 %v238_v60  ;;  %v270_v60 = vld [vmem:[%s1477_s2] sm:$0xff] }
  0xa3   :  { %381 = vmatpush.msra.mxu3 %v190_v61 }
  0xa4   :  { %320 = vmatpush.msra.mxu0 %v212_v6  ;;  %340 = vmatpush.msra.mxu1 %v213_v9  ;;  %v1230_v6 = vld [vmem:[#allocation6 + $0x38] sm:$0xff] }
  0xa5   :  { %382 = vmatpush.msra.mxu3 %v1026_v2 }
  0xa6   :  { %v144_v16 = vpop.permute.xlu0 %143  ;;  %v146_v17 = vpop.permute.xlu1 %145  ;;  %321 = vmatpush.msra.mxu0 %v187_v11  ;;  %341 = vmatpush.msra.mxu1 %v188_v13 }
  0xa7   :  { %v151_v20 = vsel %vm149_vm4, %v144_v16, %v146_v17  ;;  %v150_v21 = vsel %vm149_vm4, %v146_v17, %v148_v10  ;;  %v69_v43 = vpop.permute.xlu2 %68 }
  0xa8   :  { %v160_v22 = vmul.f32 %v1176_v14, %v151_v20  ;;  %v161_v23 = vmul.f32 %v1179_v15, %v150_v21  ;;  %322 = vmatpush.msra.mxu0 %v1018_v1  ;;  %342 = vmatpush.msra.mxu1 %v1034_v3 }
  0xaa   :  { %363 = vmatpush.msra.mxu2 %v160_v22  ;;  %383 = vmatpush.msra.mxu3 %v161_v23  ;;  %v1243_v23 = vld [vmem:[#allocation6 + $0x18] sm:$0xff] }
  0xae   :  { %v119_v28 = vpop.permute.xlu0 %118  ;;  %v121_v31 = vpop.permute.xlu1 %120 }
  0xaf   :  { %v126_v32 = vsel %vm124_vm5, %v119_v28, %v121_v31  ;;  %v125_v33 = vsel %vm124_vm5, %v121_v31, %v123_v24  ;;  %v71_v61 = vpop.permute.xlu2 %70 }
  0xb0   :  { %v135_v34 = vmul.f32 %v1190_v26, %v126_v32  ;;  %v136_v35 = vmul.f32 %v1192_v27, %v125_v33  ;;  %v75_v17 = vsel %vm74_vm7, %v69_v43, %v71_v61 }
  0xb1   :  { %v86_v31 = vmul.f32 %v1243_v23, %v75_v17 }
  0xb2   :  { %364 = vmatpush.msra.mxu2 %v135_v34  ;;  %384 = vmatpush.msra.mxu3 %v136_v35 }
  0xb6   :  { %v94_v38 = vpop.permute.xlu0 %93  ;;  %v96_v39 = vpop.permute.xlu1 %95 }
  0xb7   :  { %v101_v40 = vsel %vm99_vm6, %v94_v38, %v96_v39 }
  0xb8   :  { %v110_v42 = vmul.f32 %v1201_v37, %v101_v40 }
  0xba   :  { %365 = vmatpush.msra.mxu2 %v110_v42  ;;  %v1259_v42 = vld [vmem:[#allocation6] sm:$0xff] }
  0xbe   :  { %v142_v50 = vpop.permute.xlu0 %141  ;;  %v67_v51 = vpop.permute.xlu1 %66 }
  0xbf   :  { %v152_v52 = vsel %vm149_vm4, %v142_v50, %v144_v16  ;;  %v153_v53 = vsel %vm149_vm4, %v148_v10, %v142_v50  ;;  %v76_v54 = vsel %vm74_vm7, %v67_v51, %v69_v43  ;;  %v1261_v43 = vld [vmem:[#allocation6 + $0x8] sm:$0xff] }
  0xc0   :  { %v158_v55 = vmul.f32 %v1207_v44, %v153_v53  ;;  %v159_v56 = vmul.f32 %v1209_v45, %v152_v52  ;;  %v85_v59 = vmul.f32 %v1211_v46, %v76_v54 }
  0xc2   :  { %323 = vmatpush.msra.mxu0 %v158_v55  ;;  %343 = vmatpush.msra.mxu1 %v159_v56 }
  0xc3   :  { %366 = vmatpush.msra.mxu2 %v85_v59 }
  0xc4   :  { %847 = vmatmul.msk.f32.vlgmr.msra.gmra.mxu2 %vm307_vm8, %v270_v60 }
  0xc6   :  { %v98_v9 = vpop.permute.xlu0 %97  ;;  %v117_v10 = vpop.permute.xlu1 %116 }
  0xc7   :  { %v100_v11 = vsel %vm99_vm6, %v96_v39, %v98_v9  ;;  %v127_v13 = vsel %vm124_vm5, %v117_v10, %v119_v28  ;;  %v128_v16 = vsel %vm124_vm5, %v123_v24, %v117_v10  ;;  %v1246_v28 = vld [vmem:[#allocation6 + $0x20] sm:$0xff]  ;;  %v1248_v24 = vld [vmem:[#allocation6 + $0x28] sm:$0xff] }
  0xc8   :  { %v133_v20 = vmul.f32 %v1226_v62, %v128_v16  ;;  %v134_v21 = vmul.f32 %v1228_v63, %v127_v13  ;;  %v111_v22 = vmul.f32 %v1230_v6, %v100_v11 }
  0xca   :  { %324 = vmatpush.msra.mxu0 %v133_v20  ;;  %344 = vmatpush.msra.mxu1 %v134_v21 }
  0xcb   :  { %385 = vmatpush.msra.mxu3 %v111_v22 }
  0xcd   :  { %386 = vmatpush.msra.mxu3 %v86_v31 }
  0xce   :  { %v92_v32 = vpop.permute.xlu0 %91  ;;  %v65_v33 = vpop.permute.xlu1 %64  ;;  %848 = vmatmul.msk.f32.vlgmr.msra.gmra.mxu3 %vm307_vm8, %v270_v60 }
  0xcf   :  { %v102_v34 = vsel %vm99_vm6, %v92_v32, %v94_v38  ;;  %v103_v35 = vsel %vm99_vm6, %v98_v9, %v92_v32  ;;  %v77_v39 = vsel %vm74_vm7, %v65_v33, %v67_v51  ;;  %v78_v40 = vsel %vm74_vm7, %v71_v61, %v65_v33 }
  0xd0   :  { %v108_v50 = vmul.f32 %v1246_v28, %v103_v35  ;;  %v109_v52 = vmul.f32 %v1248_v24, %v102_v34  ;;  %v83_v38 = vmul.f32 %v1259_v42, %v78_v40  ;;  %v84_v53 = vmul.f32 %v1261_v43, %v77_v39  ;;  %v392_v39 = vld [vmem:[%s1479_s4] sm:$0xff] }
  0xd1   :  { %v963_v35 = vmov 0  }
  0xd2   :  { %325 = vmatpush.msra.mxu0 %v108_v50  ;;  %345 = vmatpush.msra.mxu1 %v109_v52 }
  0xd3   :  { %867 = vset.pattern.permute.xlu1 %v963_v35  ;;  %868 = vset.pattern.permute.xlu0 %v963_v35 }
  0xd4   :  { %326 = vmatpush.msra.mxu0 %v83_v38  ;;  %346 = vmatpush.msra.mxu1 %v84_v53 }
  0xd5   :  { %845 = vmatmul.msk.f32.vlgmr.msra.gmra.mxu0 %vm307_vm8, %v270_v60  ;;  %846 = vmatmul.msk.f32.vlgmr.msra.gmra.mxu1 %vm307_vm8, %v270_v60 }
  0xd6   :  { %436 = vperm.xlu1 %867, %v392_v39  }
 0x147   :  { %v368_v51 = vpop.f32.mrf.mxu2 }
 0x151   :  { %v388_v59 = vpop.f32.mrf.mxu3 }
 0x152   :  { %v328_v54 = vpop.f32.mrf.mxu0  ;;  %v348_v55 = vpop.f32.mrf.mxu1 }
 0x153   :  { %v393_v56 = vadd.f32 %v348_v55, %v328_v54 }
 0x155   :  { %v394_v61 = vadd.f32 %v393_v56, %v368_v51  ;;  %v391_v56 = vld [vmem:[%s1478_s3] sm:$0xff] }
 0x157   :  { %v395_v9 = vadd.f32 %v394_v61, %v388_v59 }
 0x159   :  { %396 = vadd.xlane.f32.xlu2 %v395_v9 }
 0x1cc   :  { %v397_v10 = vpop.xlane.xlu2 %396 }
 0x1cd   :  { %v398_v11 = vmul.f32 0.001953125, %v397_v10  ;;  %v437_v10 = vpop.permute.xlu1 %436 }
 0x1cf   :  { %v399_v13 = vsub.f32 %v328_v54, %v398_v11  ;;  %v400_v16 = vsub.f32 %v348_v55, %v398_v11  ;;  %v401_v17 = vsub.f32 %v368_v51, %v398_v11  ;;  %v402_v20 = vsub.f32 %v388_v59, %v398_v11 }
 0x1d1   :  { %v403_v21 = vmul.f32 %v399_v13, %v399_v13  ;;  %v404_v22 = vmul.f32 %v400_v16, %v400_v16  ;;  %v405_v31 = vmul.f32 %v401_v17, %v401_v17  ;;  %v406_v33 = vmul.f32 %v402_v20, %v402_v20 }
 0x1d3   :  { %v407_v32 = vadd.f32 %v404_v22, %v403_v21 }
 0x1d5   :  { %v408_v60 = vadd.f32 %v407_v32, %v405_v31 }
 0x1d7   :  { %v409_v34 = vadd.f32 %v408_v60, %v406_v33 }
 0x1d9   :  { %410 = vadd.xlane.f32.xlu0 %v409_v34 }
 0x24c   :  { %v411_v40 = vpop.xlane.xlu0 %410 }
 0x24d   :  { %v412_v50 = vmul.f32 0.001953125, %v411_v40 }
 0x24f   :  { %v413_v52 = vadd.f32 1e-05, %v412_v50 }
 0x251   :  { %869 = vrsqrt.f32 %v413_v52  ;;  %vm420_vm10 = vweird.f32 %v413_v52 }
 0x257   :  { %v870_v38 = vpop.eup %869 }
 0x258   :  { %v415_v53 = vmul.f32 %v870_v38, %v413_v52  ;;  %vm421_vm9 = vweird.f32 %v870_v38 }
 0x259   :  { %vm422_vm11 = vmor %vm420_vm10, %vm421_vm9 }
 0x25a   :  { %v416_v51 = vmul.f32 %v870_v38, %v415_v53 }
 0x25c   :  { %v417_v54 = vmul.f32 0.5, %v416_v51 }
 0x25e   :  { %v418_v55 = vsub.f32 1.5, %v417_v54 }
 0x260   :  { %v419_v59 = vmul.f32 %v870_v38, %v418_v55 }
 0x262   :  { %v423_v61 = vsel %vm422_vm11, %v870_v38, %v419_v59 }
 0x263   :  { %v424_v9 = vmul.f32 %v423_v61, %v391_v56 }
 0x265   :  { %427 = vperm.xlu1 %867, %v424_v9  }
 0x2d7   :  { %v428_v11 = vpop.permute.xlu1 %427 }
 0x2d8   :  { %v432_v21 = vmul.f32 %v428_v11, %v401_v17  ;;  %v433_v22 = vmul.f32 %v428_v11, %v402_v20  ;;  %v431_v33 = vmul.f32 %v428_v11, %v400_v16  ;;  %v430_v39 = vmul.f32 %v428_v11, %v399_v13 }
 0x2da   :  { %v441_v31 = vadd.f32 %v437_v10, %v432_v21  ;;  %v442_v32 = vadd.f32 %v437_v10, %v433_v22  ;;  %v440_v35 = vadd.f32 %v437_v10, %v431_v33  ;;  %v439_v16 = vadd.f32 %v437_v10, %v430_v39 }
 0x2dc   :  { %v1275_v60 = vmax.f32 %v441_v31, 0.0  ;;  %v1277_v34 = vmax.f32 %v442_v32, 0.0  ;;  %v1285_v17 = vmax.f32 %v440_v35, 0.0  ;;  %v1293_v20 = vmax.f32 %v439_v16, 0.0 }
 0x2de   :  { %601 = vrot.lane.b32.xlu2 %v1277_v34, %s955_s0  ;;  %575 = vrot.lane.b32.xlu0 %v1275_v60, %s957_s17 }
 0x2df   :  { %623 = vrot.lane.b32.xlu1 %v1275_v60, %s956_s1 }
 0x2e6   :  { %551 = vrot.lane.b32.xlu0 %v1275_v60, %s958_s18  ;;  %621 = vrot.lane.b32.xlu2 %v1285_v17, %s956_s1 }
 0x2e7   :  { %625 = vrot.lane.b32.xlu1 %v1277_v34, %s956_s1 }
 0x2ee   :  { %597 = vrot.lane.b32.xlu0 %v1285_v17, %s955_s0  ;;  %571 = vrot.lane.b32.xlu2 %v1293_v20, %s957_s17 }
 0x2ef   :  { %599 = vrot.lane.b32.xlu1 %v1275_v60, %s955_s0 }
 0x2f6   :  { %521 = vrot.lane.b32.xlu0 %v1285_v17, %s959_s19  ;;  %573 = vrot.lane.b32.xlu2 %v1285_v17, %s957_s17 }
 0x2f7   :  { %619 = vrot.lane.b32.xlu1 %v1293_v20, %s956_s1 }
 0x2fe   :  { %497 = vrot.lane.b32.xlu0 %v1285_v17, %s960_s20  ;;  %549 = vrot.lane.b32.xlu2 %v1285_v17, %s958_s18 }
 0x2ff   :  { %577 = vrot.lane.b32.xlu1 %v1277_v34, %s957_s17 }
 0x306   :  { %473 = vrot.lane.b32.xlu0 %v1285_v17, %s961_s21  ;;  %525 = vrot.lane.b32.xlu2 %v1277_v34, %s959_s19 }
 0x307   :  { %595 = vrot.lane.b32.xlu1 %v1293_v20, %s955_s0 }
 0x30e   :  { %519 = vrot.lane.b32.xlu0 %v1293_v20, %s959_s19  ;;  %501 = vrot.lane.b32.xlu2 %v1277_v34, %s960_s20 }
 0x30f   :  { %553 = vrot.lane.b32.xlu1 %v1277_v34, %s958_s18 }
 0x316   :  { %477 = vrot.lane.b32.xlu0 %v1277_v34, %s961_s21  ;;  %451 = vrot.lane.b32.xlu2 %v1275_v60, %s962_s22 }
 0x317   :  { %547 = vrot.lane.b32.xlu1 %v1293_v20, %s958_s18 }
 0x31e   :  { %471 = vrot.lane.b32.xlu0 %v1293_v20, %s961_s21  ;;  %453 = vrot.lane.b32.xlu2 %v1277_v34, %s962_s22 }
 0x31f   :  { %523 = vrot.lane.b32.xlu1 %v1275_v60, %s959_s19 }
 0x327   :  { %499 = vrot.lane.b32.xlu1 %v1275_v60, %s960_s20 }
 0x32f   :  { %475 = vrot.lane.b32.xlu1 %v1275_v60, %s961_s21 }
 0x337   :  { %449 = vrot.lane.b32.xlu1 %v1285_v17, %s962_s22 }
 0x338   :  { %v602_v13 = vpop.permute.xlu2 %601 }
 0x33f   :  { %495 = vrot.lane.b32.xlu1 %v1293_v20, %s960_s20 }
 0x340   :  { %v622_v40 = vpop.permute.xlu2 %621 }
 0x347   :  { %447 = vrot.lane.b32.xlu1 %v1293_v20, %s962_s22 }
 0x348   :  { %v572_v50 = vpop.permute.xlu2 %571 }
 0x350   :  { %v576_v52 = vpop.permute.xlu0 %575  ;;  %v574_v54 = vpop.permute.xlu2 %573 }
 0x351   :  { %v624_v38 = vpop.permute.xlu1 %623  ;;  %v580_v21 = vsel %vm203_vm2, %v574_v54, %v576_v52 }
 0x352   :  { %v628_v53 = vsel %vm253_vm0, %v622_v40, %v624_v38  ;;  %v588_v33 = vmul.f32 %v580_v21, %v1158_v58 }
 0x353   :  { %v636_v51 = vmul.f32 %v628_v53, %v1096_v12 }
 0x355   :  { %710 = vmatpush.msrb.mxu1 %v636_v51 }
 0x358   :  { %v552_v55 = vpop.permute.xlu0 %551  ;;  %v550_v10 = vpop.permute.xlu2 %549 }
 0x359   :  { %v626_v56 = vpop.permute.xlu1 %625 }
 0x35a   :  { %v627_v59 = vsel %vm253_vm0, %v624_v38, %v626_v56 }
 0x35b   :  { %v637_v61 = vmul.f32 %v627_v59, %v1102_v18  ;;  %v556_v18 = vsel %vm178_vm3, %v550_v10, %v552_v55 }
 0x35c   :  { %v564_v35 = vmul.f32 %v556_v18, %v1169_v5 }
 0x35d   :  { %730 = vmatpush.msrb.mxu2 %v637_v61 }
 0x360   :  { %v598_v9 = vpop.permute.xlu0 %597 }
 0x361   :  { %v600_v11 = vpop.permute.xlu1 %599 }
 0x362   :  { %v603_v22 = vsel %vm228_vm1, %v600_v11, %v602_v13  ;;  %v604_v12 = vsel %vm228_vm1, %v598_v9, %v600_v11 }
 0x363   :  { %v612_v31 = vmul.f32 %v604_v12, %v1142_v48  ;;  %v613_v32 = vmul.f32 %v603_v22, %v1112_v25 }
 0x365   :  { %711 = vmatpush.msrb.mxu1 %v612_v31  ;;  %731 = vmatpush.msrb.mxu2 %v613_v32 }
 0x367   :  { %712 = vmatpush.msrb.mxu1 %v588_v33 }
 0x368   :  { %v522_v39 = vpop.permute.xlu0 %521 }
 0x369   :  { %713 = vmatpush.msrb.mxu1 %v564_v35  ;;  %v620_v16 = vpop.permute.xlu1 %619 }
 0x36a   :  { %v629_v38 = vsel %vm253_vm0, %v620_v16, %v622_v40  ;;  %v630_v48 = vsel %vm253_vm0, %v626_v56, %v620_v16 }
 0x36b   :  { %714 = vmatpush.msrb.mxu1 %v1285_v17  ;;  %v635_v25 = vmul.f32 %v629_v38, %v1090_v8  ;;  %v638_v53 = vmul.f32 %v630_v48, %v1104_v19  ;;  %v581_v17 = vsel %vm203_vm2, %v572_v50, %v574_v54 }
 0x36c   :  { %v587_v11 = vmul.f32 %v581_v17, %v1156_v57 }
 0x36d   :  { %690 = vmatpush.msrb.mxu0 %v635_v25  ;;  %750 = vmatpush.msrb.mxu3 %v638_v53 }
 0x370   :  { %v1372_v58 = vpop.permute.xlu0 %497 }
 0x371   :  { %v578_v5 = vpop.permute.xlu1 %577 }
 0x372   :  { %v579_v51 = vsel %vm203_vm2, %v576_v52, %v578_v5  ;;  %v582_v8 = vsel %vm203_vm2, %v578_v5, %v572_v50  ;;  %v526_v50 = vpop.permute.xlu2 %525  ;;  %v643_v5 = vld [vmem:[%s1480_s5] sm:$0xff] }
 0x373   :  { %v589_v59 = vmul.f32 %v579_v51, %v1118_v29  ;;  %v590_v21 = vmul.f32 %v582_v8, %v1128_v36 }
 0x375   :  { %732 = vmatpush.msrb.mxu2 %v589_v59 }
 0x378   :  { %v1377_v40 = vpop.permute.xlu0 %473 }
 0x379   :  { %v596_v56 = vpop.permute.xlu1 %595 }
 0x37a   :  { %v605_v19 = vsel %vm228_vm1, %v596_v56, %v598_v9  ;;  %v606_v61 = vsel %vm228_vm1, %v602_v13, %v596_v56  ;;  %v502_v31 = vpop.permute.xlu2 %501 }
 0x37b   :  { %v611_v52 = vmul.f32 %v605_v19, %v1140_v47  ;;  %v614_v29 = vmul.f32 %v606_v61, %v1120_v30 }
 0x37d   :  { %691 = vmatpush.msrb.mxu0 %v611_v52  ;;  %751 = vmatpush.msrb.mxu3 %v614_v29 }
 0x37f   :  { %692 = vmatpush.msrb.mxu0 %v587_v11  ;;  %752 = vmatpush.msrb.mxu3 %v590_v21 }
 0x380   :  { %v520_v54 = vpop.permute.xlu0 %519 }
 0x381   :  { %v529_v9 = vsel %vm149_vm4, %v520_v54, %v522_v39  ;;  %v554_v22 = vpop.permute.xlu1 %553 }
 0x382   :  { %v555_v13 = vsel %vm178_vm3, %v552_v55, %v554_v22  ;;  %v536_v47 = vmul.f32 %v529_v9, %v1209_v45  ;;  %v530_v45 = vsel %vm149_vm4, %v526_v50, %v520_v54  ;;  %v452_v33 = vpop.permute.xlu2 %451 }
 0x383   :  { %v565_v30 = vmul.f32 %v555_v13, %v1134_v41  ;;  %v535_v41 = vmul.f32 %v530_v45, %v1207_v44 }
 0x384   :  { %715 = vmatpush.msrb.mxu1 %v536_v47 }
 0x385   :  { %733 = vmatpush.msrb.mxu2 %v565_v30 }
 0x387   :  { %734 = vmatpush.msrb.mxu2 %v1275_v60 }
 0x389   :  { %v548_v36 = vpop.permute.xlu1 %547 }
 0x38a   :  { %v557_v57 = vsel %vm178_vm3, %v548_v36, %v550_v10  ;;  %v558_v12 = vsel %vm178_vm3, %v554_v22, %v548_v36 }
 0x38b   :  { %v563_v32 = vmul.f32 %v557_v57, %v1167_v4  ;;  %v566_v55 = vmul.f32 %v558_v12, %v1144_v49 }
 0x38d   :  { %693 = vmatpush.msrb.mxu0 %v563_v32  ;;  %753 = vmatpush.msrb.mxu3 %v566_v55 }
 0x38f   :  { %694 = vmatpush.msrb.mxu0 %v1293_v20  ;;  %754 = vmatpush.msrb.mxu3 %v1277_v34 }
 0x391   :  { %695 = vmatpush.msrb.mxu0 %v535_v41  ;;  %v524_v60 = vpop.permute.xlu1 %523 }
 0x392   :  { %v527_v10 = vsel %vm149_vm4, %v524_v60, %v526_v50  ;;  %v528_v4 = vsel %vm149_vm4, %v522_v39, %v524_v60  ;;  %v478_v39 = vpop.permute.xlu0 %477 }
 0x393   :  { %v537_v49 = vmul.f32 %v528_v4, %v1176_v14  ;;  %v538_v18 = vmul.f32 %v527_v10, %v1179_v15  ;;  %v454_v14 = vpop.permute.xlu2 %453 }
 0x394   :  { %v455_v38 = vsel %vm74_vm7, %v452_v33, %v454_v14 }
 0x395   :  { %735 = vmatpush.msrb.mxu2 %v537_v49  ;;  %755 = vmatpush.msrb.mxu3 %v538_v18 }
 0x399   :  { %v500_v20 = vpop.permute.xlu1 %499 }
 0x39a   :  { %v503_v34 = vsel %vm124_vm5, %v500_v20, %v502_v31  ;;  %v504_v44 = vsel %vm124_vm5, %v1372_v58, %v500_v20 }
 0x39b   :  { %v513_v35 = vmul.f32 %v504_v44, %v1190_v26  ;;  %v514_v16 = vmul.f32 %v503_v34, %v1192_v27  ;;  %v466_v27 = vmul.f32 %v455_v38, %v1243_v23  ;;  %v763_v34 = vld [vmem:[%s1481_s6] sm:$0xff]  ;;  %s964_s6 = smov [#allocation8]  }
 0x39d   :  { %736 = vmatpush.msrb.mxu2 %v513_v35  ;;  %756 = vmatpush.msrb.mxu3 %v514_v16 }
 0x3a1   :  { %v476_v15 = vpop.permute.xlu1 %475 }
 0x3a2   :  { %v479_v48 = vsel %vm99_vm6, %v476_v15, %v478_v39  ;;  %v480_v25 = vsel %vm99_vm6, %v1377_v40, %v476_v15 }
 0x3a3   :  { %v489_v53 = vmul.f32 %v480_v25, %v1201_v37  ;;  %v490_v26 = vmul.f32 %v479_v48, %v1230_v6  ;;  %v472_v37 = vpop.permute.xlu0 %471 }
 0x3a4   :  { %v481_v23 = vsel %vm99_vm6, %v472_v37, %v1377_v40  ;;  %v482_v17 = vsel %vm99_vm6, %v478_v39, %v472_v37 }
 0x3a5   :  { %737 = vmatpush.msrb.mxu2 %v489_v53  ;;  %757 = vmatpush.msrb.mxu3 %v490_v26  ;;  %v487_v52 = vmul.f32 %v482_v17, %v1246_v28  ;;  %v488_v40 = vmul.f32 %v481_v23, %v1248_v24 }
 0x3a7   :  { %758 = vmatpush.msrb.mxu3 %v466_v27 }
 0x3a8   :  { %852 = vmatmul.msk.f32.vlgmr.msrb.gmra.mxu3 %vm307_vm8, %v643_v5 }
 0x3a9   :  { %v450_v51 = vpop.permute.xlu1 %449 }
 0x3aa   :  { %v456_v59 = vsel %vm74_vm7, %v450_v51, %v452_v33 }
 0x3ab   :  { %v465_v56 = vmul.f32 %v456_v59, %v1211_v46 }
 0x3ad   :  { %738 = vmatpush.msrb.mxu2 %v465_v56 }
 0x3ae   :  { %851 = vmatmul.msk.f32.vlgmr.msrb.gmra.mxu2 %vm307_vm8, %v643_v5 }
 0x3b1   :  { %v496_v6 = vpop.permute.xlu1 %495 }
 0x3b2   :  { %v505_v8 = vsel %vm124_vm5, %v496_v6, %v1372_v58  ;;  %v506_v19 = vsel %vm124_vm5, %v502_v31, %v496_v6 }
 0x3b3   :  { %v511_v46 = vmul.f32 %v506_v19, %v1226_v62  ;;  %v512_v61 = vmul.f32 %v505_v8, %v1228_v63 }
 0x3b5   :  { %696 = vmatpush.msrb.mxu0 %v511_v46  ;;  %716 = vmatpush.msrb.mxu1 %v512_v61 }
 0x3b7   :  { %697 = vmatpush.msrb.mxu0 %v487_v52  ;;  %717 = vmatpush.msrb.mxu1 %v488_v40 }
 0x3b9   :  { %v448_v29 = vpop.permute.xlu1 %447 }
 0x3ba   :  { %v457_v11 = vsel %vm74_vm7, %v448_v29, %v450_v51  ;;  %v458_v58 = vsel %vm74_vm7, %v454_v14, %v448_v29  ;;  %v764_v14 = vld [vmem:[%s1482_s7] sm:$0xff]  ;;  %s832_s7 = sshll.u32 %s964_s6, 4  ;;  %s833_s7 = int_to_ptr.vmem [resolvable:$true] %s832_s7 }
 0x3bb   :  { %v463_v21 = vmul.f32 %v458_v58, %v1259_v42  ;;  %v464_v62 = vmul.f32 %v457_v11, %v1261_v43 }
 0x3bd   :  { %698 = vmatpush.msrb.mxu0 %v463_v21  ;;  %718 = vmatpush.msrb.mxu1 %v464_v62 }
 0x3be   :  { %849 = vmatmul.msk.f32.vlgmr.msrb.gmra.mxu0 %vm307_vm8, %v643_v5  ;;  %850 = vmatmul.msk.f32.vlgmr.msrb.gmra.mxu1 %vm307_vm8, %v643_v5 }
 0x42b   :  { %v760_v50 = vpop.f32.mrf.mxu3 }
 0x431   :  { %v740_v63 = vpop.f32.mrf.mxu2 }
 0x43b   :  { %v700_v28 = vpop.f32.mrf.mxu0  ;;  %v720_v24 = vpop.f32.mrf.mxu1 }
 0x43c   :  { %v765_v54 = vadd.f32 %v720_v24, %v700_v28 }
 0x43e   :  { %v766_v9 = vadd.f32 %v765_v54, %v740_v63 }
 0x440   :  { %v767_v22 = vadd.f32 %v766_v9, %v760_v50 }
 0x442   :  { %768 = vadd.xlane.f32.xlu2 %v767_v22 }
 0x4b5   :  { %v769_v7 = vpop.xlane.xlu2 %768 }
 0x4b6   :  { %v770_v13 = vmul.f32 0.001953125, %v769_v7 }
 0x4b8   :  { %v771_v47 = vsub.f32 %v700_v28, %v770_v13  ;;  %v772_v42 = vsub.f32 %v720_v24, %v770_v13  ;;  %v773_v30 = vsub.f32 %v740_v63, %v770_v13  ;;  %v774_v43 = vsub.f32 %v760_v50, %v770_v13 }
 0x4ba   :  { %v775_v36 = vmul.f32 %v771_v47, %v771_v47  ;;  %v776_v57 = vmul.f32 %v772_v42, %v772_v42  ;;  %v777_v12 = vmul.f32 %v773_v30, %v773_v30  ;;  %v778_v32 = vmul.f32 %v774_v43, %v774_v43 }
 0x4bc   :  { %v779_v31 = vadd.f32 %v776_v57, %v775_v36 }
 0x4be   :  { %v780_v55 = vadd.f32 %v779_v31, %v777_v12 }
 0x4c0   :  { %v781_v45 = vadd.f32 %v780_v55, %v778_v32 }
 0x4c2   :  { %782 = vadd.xlane.f32.xlu0 %v781_v45 }
 0x535   :  { %v783_v41 = vpop.xlane.xlu0 %782 }
 0x536   :  { %v784_v60 = vmul.f32 0.001953125, %v783_v41 }
 0x538   :  { %v785_v10 = vadd.f32 1e-05, %v784_v60 }
 0x53a   :  { %871 = vrsqrt.f32 %v785_v10  ;;  %vm792_vm13 = vweird.f32 %v785_v10 }
 0x540   :  { %v872_v4 = vpop.eup %871 }
 0x541   :  { %v787_v49 = vmul.f32 %v872_v4, %v785_v10  ;;  %vm793_vm12 = vweird.f32 %v872_v4 }
 0x542   :  { %vm794_vm14 = vmor %vm792_vm13, %vm793_vm12 }
 0x543   :  { %v788_v18 = vmul.f32 %v872_v4, %v787_v49 }
 0x545   :  { %v789_v33 = vmul.f32 0.5, %v788_v18 }
 0x547   :  { %v790_v20 = vsub.f32 1.5, %v789_v33 }
 0x549   :  { %v791_v44 = vmul.f32 %v872_v4, %v790_v20 }
 0x54b   :  { %v795_v35 = vsel %vm794_vm14, %v872_v4, %v791_v44 }
 0x54c   :  { %v796_v16 = vmul.f32 %v795_v35, %v763_v34 }
 0x54e   :  { %799 = vperm.xlu1 %867, %v796_v16  }
 0x556   :  { %808 = vperm.xlu1 %867, %v764_v14  }
 0x5c0   :  { %v800_v39 = vpop.permute.xlu1 %799 }
 0x5c1   :  { %v802_v15 = vmul.f32 %v800_v39, %v771_v47  ;;  %v803_v38 = vmul.f32 %v800_v39, %v772_v42  ;;  %v804_v48 = vmul.f32 %v800_v39, %v773_v30  ;;  %v805_v25 = vmul.f32 %v800_v39, %v774_v43 }
 0x5c8   :  { %v809_v53 = vpop.permute.xlu1 %808 }
 0x5c9   :  { %v811_v26 = vadd.f32 %v809_v53, %v802_v15  ;;  %v812_v27 = vadd.f32 %v809_v53, %v803_v38  ;;  %v813_v5 = vadd.f32 %v809_v53, %v804_v48  ;;  %v814_v51 = vadd.f32 %v809_v53, %v805_v25 }
 0x5cb   :  { %v815_v59 = vadd.f32 %v811_v26, %v1018_v1  ;;  %v816_v56 = vadd.f32 %v812_v27, %v1034_v3  ;;  %v817_v37 = vadd.f32 %v813_v5, %v1016_v0  ;;  %v818_v6 = vadd.f32 %v814_v51, %v1026_v2 }
 0x5cd   :  { %v819_v23 = vmax.f32 %v815_v59, 0.0  ;;  %v820_v17 = vmax.f32 %v816_v56, 0.0  ;;  %v821_v8 = vmax.f32 %v817_v37, 0.0  ;;  %v822_v19 = vmax.f32 %v818_v6, 0.0 }
 0x5cf   :  { %823 = vst [vmem:[#allocation8] sm:$0xff] %v819_v23 }
 0x5d0   :  { %824 = vst [vmem:[#allocation8 + $0x8] sm:$0xff] %v820_v17 }
 0x5d1   :  { %825 = vst [vmem:[#allocation8 + $0x10] sm:$0xff] %v821_v8 }
 0x5d2   :  { %826 = vst [vmem:[#allocation8 + $0x18] sm:$0xff] %v822_v19 }
 0x5d3   :  { %837 = dma.vmem_to_hbm [thread:$0]  %s833_s7, 512, %s835_s11, [#allocation5]  }
 0x5d4   :  { %949 = dma.done.wait [#allocation5], 512  }
 0x5d5   :  { %950 = vsyncadd [#allocation5], 4294966784 }
 0x5d6   :  { %842 = vsyncpa [#allocation4], 1 }
 0x5d7   :  { %843 = vsyncpa [#allocation7], 1 }
 0x5d8   :  { %844 = vsyncpa [#allocation5], 1 }

</bundles_post_ra>
